<compile_context>
chip_gen: v6e
topology: v6e:2x2x1
jax: 0.10.0
libtpu: 0.0.40
codegen_flags: <defaults>
</compile_context>

<pallas_src>
import jax
import jax.numpy as jnp
from jax.experimental import pallas as pl
from jax.experimental.pallas import tpu as pltpu


def _round_up(a: int, b: int) -> int:
    return (a + b - 1) // b * b


def _gcn_kernel(nz_ref, adj_ref, x_ref, w_ref, b_ref, out_ref, acc_ref, rs_ref):
    i = pl.program_id(0)      # output row tile
    k = pl.program_id(1)      # adjacency reduction tile (last grid axis)

    @pl.when(k == 0)
    def _init():
        acc_ref[...] = jnp.zeros_like(acc_ref)
        rs_ref[...] = jnp.zeros_like(rs_ref)

    # Skip all-zero adjacency tiles (block-level sparsity, compute-side skip).
    @pl.when(nz_ref[i, k] != 0)
    def _accumulate():
        adj = adj_ref[...]                                   # (tm, tk) bf16
        # Aggregate in the narrow input-feature dim: acc += adj @ x   (MXU)
        acc_ref[...] += jnp.dot(adj, x_ref[...],
                                preferred_element_type=jnp.float32)
        # Row-sums of adj: exact bias term for the reassociated form
        #   adj @ (xW + b) == (adj @ x) @ W + rowsum(adj)[:, None] * b
        rs_ref[...] += jnp.sum(adj.astype(jnp.float32), axis=-1, keepdims=True)

    @pl.when(k == pl.num_programs(1) - 1)
    def _finalize():
        # Small projection kept in f32 (cheap relative to the N^2 term).
        proj = jnp.dot(acc_ref[...], w_ref[...],
                       preferred_element_type=jnp.float32)
        out_ref[...] = (proj + rs_ref[...] * b_ref[...]).astype(out_ref.dtype)


def gcn_layer(x, weight, bias, adj):
    """Pallas GCN layer forward: adj @ (x @ weight + bias)."""
    n, f_in = x.shape
    f_out = weight.shape[1]
    out_dtype = x.dtype
    if bias is None:
        bias = jnp.zeros((f_out,), dtype=jnp.float32)

    # TODO(synk): when f_out < f_in it is cheaper to project first (h = xW+b)
    # and aggregate adj @ h; this kernel always aggregates first, optimal for
    # f_in <= f_out (the case here: 16 <= 32).

    # ---- padding: lane-dense feature dims, (8,128)-aligned row/k tiles ------
    f_in_p = _round_up(f_in, 128)
    f_out_p = _round_up(f_out, 128)
    if n >= 512:
        tm, tk = 256, 512
        n_p = _round_up(n, 512)
    else:
        n_p = _round_up(n, 128)
        tm = tk = n_p
    gm, gk = n_p // tm, n_p // tk

    adj_p = jnp.zeros((n_p, n_p), jnp.float32).at[:n, :n].set(
        adj.astype(jnp.float32))
    x_p = jnp.zeros((n_p, f_in_p), jnp.float32).at[:n, :f_in].set(
        x.astype(jnp.float32))
    w_p = jnp.zeros((f_in_p, f_out_p), jnp.float32).at[:f_in, :f_out].set(
        weight.astype(jnp.float32))
    b_p = jnp.zeros((1, f_out_p), jnp.float32).at[0, :f_out].set(
        bias.astype(jnp.float32))

    # bf16 MXU operands (f32 accumulation inside the kernel).
    adj_bf = adj_p.astype(jnp.bfloat16)
    x_bf = x_p.astype(jnp.bfloat16)

    # Per-(row-tile, k-tile) nonzero bitmap of adj, scalar-prefetched to SMEM.
    nz = (jnp.abs(adj_p).reshape(gm, tm, gk, tk).sum(axis=(1, 3)) > 0
          ).astype(jnp.int32)

    out_itemsize = jnp.dtype(out_dtype).itemsize
    flops = 2.0 * n_p * n_p * f_in_p + 2.0 * n_p * f_in_p * f_out_p
    bytes_accessed = (adj_bf.size * 2 + x_bf.size * 2 + w_p.size * 4 +
                      b_p.size * 4 + n_p * f_out_p * out_itemsize)

    grid_spec = pltpu.PrefetchScalarGridSpec(
        num_scalar_prefetch=1,
        grid=(gm, gk),
        in_specs=[
            pl.BlockSpec((tm, tk), lambda i, k, nz_s: (i, k)),           # adj
            pl.BlockSpec((tk, f_in_p), lambda i, k, nz_s: (k, 0)),       # x
            pl.BlockSpec((f_in_p, f_out_p), lambda i, k, nz_s: (0, 0)),  # W
            pl.BlockSpec((1, f_out_p), lambda i, k, nz_s: (0, 0)),       # bias
        ],
        out_specs=pl.BlockSpec((tm, f_out_p), lambda i, k, nz_s: (i, 0)),
        scratch_shapes=[
            pltpu.VMEM((tm, f_in_p), jnp.float32),   # adj @ x accumulator
            pltpu.VMEM((tm, 1), jnp.float32),        # rowsum(adj) accumulator
        ],
    )

    out_p = pl.pallas_call(
        _gcn_kernel,
        out_shape=jax.ShapeDtypeStruct((n_p, f_out_p), out_dtype),
        grid_spec=grid_spec,
        compiler_params=pltpu.CompilerParams(
            dimension_semantics=("parallel", "arbitrary"),
            vmem_limit_bytes=32 * 1024 * 1024,
        ),
        cost_estimate=pl.CostEstimate(
            flops=int(flops), transcendentals=0,
            bytes_accessed=int(bytes_accessed)),
    )(nz, adj_bf, x_bf, w_p, b_p)

    return out_p[:n, :f_out]


def xavier_uniform(key, fan_in, fan_out, dtype=jnp.float32):
    bound = (6.0 / (fan_in + fan_out)) ** 0.5
    return jax.random.uniform(key, (fan_in, fan_out), dtype=dtype,
                              minval=-bound, maxval=bound)


if __name__ == "__main__":
    # Small, module-consistent shapes: N=8 nodes, in_features=16, out_features=32.
    N, F_IN, F_OUT = 8, 16, 32
    key = jax.random.PRNGKey(0)
    k_x, k_adj, k_w = jax.random.split(key, 3)

    x = jax.random.normal(k_x, (N, F_IN), dtype=jnp.float32)

    # Dense adjacency (stand-in for the sparse adj in torch.sparse.mm).
    adj_raw = (jax.random.uniform(k_adj, (N, N)) > 0.5).astype(jnp.float32)
    adj = adj_raw + jnp.eye(N, dtype=jnp.float32)  # self-loops, values {0,1,2}

    # Deterministic parameter init matching the module: xavier weight, zero bias.
    weight = xavier_uniform(k_w, F_IN, F_OUT)
    bias = jnp.zeros((F_OUT,), dtype=jnp.float32)

    out = gcn_layer(x, weight, bias, adj)
    out = jax.block_until_ready(out)
    assert out.shape == (N, F_OUT)

    # Reference 1: same operand precision as the kernel's MXU path (x rounded
    # to bf16, adj values {0,1,2} are bf16-exact), f32 math otherwise.
    x_bf = x.astype(jnp.bfloat16).astype(jnp.float32)
    ref_bf = adj @ (x_bf @ weight + bias)
    assert jnp.allclose(out, ref_bf, atol=1e-3, rtol=1e-3)

    # Reference 2: pure-f32 module math; loose tolerance accounts for the
    # bf16 operand cast on the MXU path.
    ref_f32 = adj @ (x @ weight + bias)
    assert jnp.allclose(out, ref_f32, atol=5e-2, rtol=5e-2)

    print("KERNEL_OK")
</pallas_src>

<mosaic_0001>
module attributes {stable_mosaic.version = 11 : i64} {
  func.func @_gcn_kernel(%arg0: i32, %arg1: i32, %arg2: memref<1x1xi32, #tpu.memory_space<smem>>, %arg3: memref<128x128xbf16, #tpu.memory_space<vmem>>, %arg4: memref<128x128xbf16, #tpu.memory_space<vmem>>, %arg5: memref<128x128xf32, #tpu.memory_space<vmem>>, %arg6: memref<1x128xf32, #tpu.memory_space<vmem>>, %arg7: memref<128x128xf32, #tpu.memory_space<vmem>>, %arg8: memref<128x128xf32, #tpu.memory_space<vmem>>, %arg9: memref<128x1xf32, #tpu.memory_space<vmem>>) attributes {dimension_semantics = [#tpu.dimension_semantics<parallel>, #tpu.dimension_semantics<arbitrary>], iteration_bounds = array<i64: 1, 1>, scalar_prefetch = 1 : i64, scratch_operands = 2 : i64, tpu.core_type = #tpu.core_type<tc>, window_params = [{transform_indices = @transform_0, window_bounds = array<i64: 128, 128>}, {transform_indices = @transform_1, window_bounds = array<i64: 128, 128>}, {pipeline_mode = #tpu.pipeline_mode<synchronous>, transform_indices = @transform_2, window_bounds = array<i64: 128, 128>}, {pipeline_mode = #tpu.pipeline_mode<synchronous>, transform_indices = @transform_3, window_bounds = array<i64: 1, 128>}, {transform_indices = @transform_4, window_bounds = array<i64: 128, 128>}]} {
    %c0_i32 = arith.constant 0 : i32
    %0 = arith.cmpi eq, %arg1, %c0_i32 : i32
    %1 = arith.extui %0 : i1 to i32
    %c0_i32_0 = arith.constant 0 : i32
    %2 = arith.cmpi ne, %1, %c0_i32_0 : i32
    scf.if %2 {
      %cst = arith.constant 0.000000e+00 : f32
      %12 = vector.broadcast %cst : f32 to vector<128x128xf32>
      %c0 = arith.constant 0 : index
      %c0_5 = arith.constant 0 : index
      %13 = vector.load %arg8[%c0, %c0_5] : memref<128x128xf32, #tpu.memory_space<vmem>>, vector<128x128xf32>
      tpu.vector_store %arg8[%c0, %c0_5], %12 {strides = array<i32>} : memref<128x128xf32, #tpu.memory_space<vmem>>, vector<128x128xf32>,
      %cst_6 = arith.constant 0.000000e+00 : f32
      %14 = vector.broadcast %cst_6 : f32 to vector<128x1xf32>
      %c0_7 = arith.constant 0 : index
      %c0_8 = arith.constant 0 : index
      %15 = vector.load %arg9[%c0_7, %c0_8] : memref<128x1xf32, #tpu.memory_space<vmem>>, vector<128x1xf32>
      tpu.vector_store %arg9[%c0_7, %c0_8], %14 {strides = array<i32>} : memref<128x1xf32, #tpu.memory_space<vmem>>, vector<128x1xf32>,
    } else {
    }
    %3 = arith.index_cast %arg0 : i32 to index
    %4 = arith.index_cast %arg1 : i32 to index
    %5 = memref.load %arg2[%3, %4] : memref<1x1xi32, #tpu.memory_space<smem>>
    %c0_i32_1 = arith.constant 0 : i32
    %6 = arith.cmpi ne, %5, %c0_i32_1 : i32
    %7 = arith.extui %6 : i1 to i32
    %c0_i32_2 = arith.constant 0 : i32
    %8 = arith.cmpi ne, %7, %c0_i32_2 : i32
    scf.if %8 {
      %c0 = arith.constant 0 : index
      %c0_5 = arith.constant 0 : index
      %12 = vector.load %arg3[%c0, %c0_5] : memref<128x128xbf16, #tpu.memory_space<vmem>>, vector<128x128xbf16>
      %c0_6 = arith.constant 0 : index
      %c0_7 = arith.constant 0 : index
      %13 = vector.load %arg8[%c0_6, %c0_7] : memref<128x128xf32, #tpu.memory_space<vmem>>, vector<128x128xf32>
      %c0_8 = arith.constant 0 : index
      %c0_9 = arith.constant 0 : index
      %14 = vector.load %arg4[%c0_8, %c0_9] : memref<128x128xbf16, #tpu.memory_space<vmem>>, vector<128x128xbf16>
      %cst = arith.constant dense<0.000000e+00> : vector<128x128xf32>
      %15 = tpu.matmul %12, %14, %cst {dimension_numbers = #tpu.dot_dimension_numbers<[1], [0], [0], [1], [0, 0, 1, 1], [], []>} : vector<128x128xbf16>, vector<128x128xbf16>, vector<128x128xf32> -> vector<128x128xf32>
      %16 = arith.addf %13, %15 : vector<128x128xf32>
      %c0_10 = arith.constant 0 : index
      %c0_11 = arith.constant 0 : index
      %17 = vector.load %arg8[%c0_10, %c0_11] : memref<128x128xf32, #tpu.memory_space<vmem>>, vector<128x128xf32>
      tpu.vector_store %arg8[%c0_10, %c0_11], %16 {strides = array<i32>} : memref<128x128xf32, #tpu.memory_space<vmem>>, vector<128x128xf32>,
      %c0_12 = arith.constant 0 : index
      %c0_13 = arith.constant 0 : index
      %18 = vector.load %arg9[%c0_12, %c0_13] : memref<128x1xf32, #tpu.memory_space<vmem>>, vector<128x1xf32>
      %19 = arith.extf %12 : vector<128x128xbf16> to vector<128x128xf32>
      %cst_14 = arith.constant dense<0.000000e+00> : vector<128xf32>
      %20 = vector.multi_reduction <add>, %19, %cst_14 [1] : vector<128x128xf32> to vector<128xf32>
      %21 = vector.shape_cast %20 : vector<128xf32> to vector<128x1xf32>
      %22 = arith.addf %18, %21 : vector<128x1xf32>
      %c0_15 = arith.constant 0 : index
      %c0_16 = arith.constant 0 : index
      %23 = vector.load %arg9[%c0_15, %c0_16] : memref<128x1xf32, #tpu.memory_space<vmem>>, vector<128x1xf32>
      tpu.vector_store %arg9[%c0_15, %c0_16], %22 {strides = array<i32>} : memref<128x1xf32, #tpu.memory_space<vmem>>, vector<128x1xf32>,
    } else {
    }
    %c0_i32_3 = arith.constant 0 : i32
    %9 = arith.cmpi eq, %arg1, %c0_i32_3 : i32
    %10 = arith.extui %9 : i1 to i32
    %c0_i32_4 = arith.constant 0 : i32
    %11 = arith.cmpi ne, %10, %c0_i32_4 : i32
    scf.if %11 {
      %c0 = arith.constant 0 : index
      %c0_5 = arith.constant 0 : index
      %12 = vector.load %arg8[%c0, %c0_5] : memref<128x128xf32, #tpu.memory_space<vmem>>, vector<128x128xf32>
      %c0_6 = arith.constant 0 : index
      %c0_7 = arith.constant 0 : index
      %13 = vector.load %arg5[%c0_6, %c0_7] : memref<128x128xf32, #tpu.memory_space<vmem>>, vector<128x128xf32>
      %cst = arith.constant dense<0.000000e+00> : vector<128x128xf32>
      %14 = tpu.matmul %12, %13, %cst {dimension_numbers = #tpu.dot_dimension_numbers<[1], [0], [0], [1], [0, 0, 1, 1], [], []>} : vector<128x128xf32>, vector<128x128xf32>, vector<128x128xf32> -> vector<128x128xf32>
      %c0_8 = arith.constant 0 : index
      %c0_9 = arith.constant 0 : index
      %15 = vector.load %arg9[%c0_8, %c0_9] : memref<128x1xf32, #tpu.memory_space<vmem>>, vector<128x1xf32>
      %c0_10 = arith.constant 0 : index
      %c0_11 = arith.constant 0 : index
      %16 = vector.load %arg6[%c0_10, %c0_11] : memref<1x128xf32, #tpu.memory_space<vmem>>, vector<1x128xf32>
      %17 = vector.broadcast %15 : vector<128x1xf32> to vector<128x128xf32>
      %18 = vector.broadcast %16 : vector<1x128xf32> to vector<128x128xf32>
      %19 = arith.mulf %17, %18 : vector<128x128xf32>
      %20 = arith.addf %14, %19 : vector<128x128xf32>
      %c0_12 = arith.constant 0 : index
      %c0_13 = arith.constant 0 : index
      %21 = vector.load %arg7[%c0_12, %c0_13] : memref<128x128xf32, #tpu.memory_space<vmem>>, vector<128x128xf32>
      tpu.vector_store %arg7[%c0_12, %c0_13], %20 {strides = array<i32>} : memref<128x128xf32, #tpu.memory_space<vmem>>, vector<128x128xf32>,
    } else {
    }
    return
  }
  func.func @transform_0(%arg0: i32, %arg1: i32, %arg2: memref<1x1xi32, #tpu.memory_space<smem>>) -> (i32, i32) {
    %c0_i32 = arith.constant 0 : i32
    return %arg0, %arg1 : i32, i32
  }
  func.func @transform_1(%arg0: i32, %arg1: i32, %arg2: memref<1x1xi32, #tpu.memory_space<smem>>) -> (i32, i32) {
    %c0_i32 = arith.constant 0 : i32
    %c0_i32_0 = arith.constant 0 : i32
    return %arg1, %c0_i32 : i32, i32
  }
  func.func @transform_2(%arg0: i32, %arg1: i32, %arg2: memref<1x1xi32, #tpu.memory_space<smem>>) -> (i32, i32) {
    %c0_i32 = arith.constant 0 : i32
    %c0_i32_0 = arith.constant 0 : i32
    %c0_i32_1 = arith.constant 0 : i32
    return %c0_i32, %c0_i32_0 : i32, i32
  }
  func.func @transform_3(%arg0: i32, %arg1: i32, %arg2: memref<1x1xi32, #tpu.memory_space<smem>>) -> (i32, i32) {
    %c0_i32 = arith.constant 0 : i32
    %c0_i32_0 = arith.constant 0 : i32
    %c0_i32_1 = arith.constant 0 : i32
    return %c0_i32, %c0_i32_0 : i32, i32
  }
  func.func @transform_4(%arg0: i32, %arg1: i32, %arg2: memref<1x1xi32, #tpu.memory_space<smem>>) -> (i32, i32) {
    %c0_i32 = arith.constant 0 : i32
    %c0_i32_0 = arith.constant 0 : i32
    return %arg0, %c0_i32 : i32, i32
  }
}

</mosaic_0001>

<bundles_post_ra>
// kernel: tpu_custom_call.1
= control target key start
LH: loop header
LB: loop body
LE: loop exit
PB: predicated region body
PF: predicated region fallthrough
CT: control target
= control target key end

     0   :  { %11 = vsyncpa [#allocation7], 0  ;;  %s1230_s0 = inlined_call_operand.<no memory space> [shape: s32[1,1], index: 0, kind: input, shape index: {}]   ;;  %s1231_s1 = inlined_call_operand.hbm [shape: bf16[128,128], index: 1, kind: input, shape index: {}]   ;;  %s1232_s2 = inlined_call_operand.hbm [shape: bf16[128,128], index: 2, kind: input, shape index: {}]   ;;  %s1233_s3 = inlined_call_operand.hbm [shape: f32[128,128], index: 3, kind: input, shape index: {}]   ;;  %s1234_s4 = inlined_call_operand.vmem [shape: f32[1,128], index: 4, kind: input, shape index: {}]   ;;  %s1235_s5 = inlined_call_operand.hbm [shape: f32[128,128], index: 5, kind: output, shape index: {}]  }
   0x1   :  { %12 = vsyncpa [#allocation10], 0 }
   0x2   :  { %13 = vsyncpa [#allocation8], 0  ;;  %s1134_s18 = smov [#allocation9]   ;;  %s1135_s20 = smov [#allocation6]  }
   0x3   :  { %s31_s19 = sshll.u32 %s1134_s18, 4  ;;  %s19_s21 = sshll.u32 %s1135_s20, 4  ;;  %s32_s19 = int_to_ptr.vmem [resolvable:$true] %s31_s19  ;;  %s20_s21 = int_to_ptr.vmem [resolvable:$true] %s19_s21 }
   0x4   :  { %s1056_s22 = scalar_lea.vmem %s32_s19, 1024  ;;  %p1061_p1 = scmp.lt.s32.totalorder %s32_s19, %s32_s19 }
   0x5   :  { %p1057_p0 = scmp.ne.s32.totalorder %s32_s19, %s1056_s22  ;;  %p1062_p2 = scmp.lt.s32.totalorder %s1056_s22, %s1056_s22 }
   0x7   :  { %p1063_p3 = por %p1062_p2, %p1061_p1 }
   0x9   :  { %p1064_p4 = pnand %p1063_p3, %p1057_p0 }
   0xb   :  { %1067 = shalt.err (!%p1064_p4)
}
   0xc   :  { %s1136_s23 = smov 64   ;;  %s1137_s24 = smov 4  }
   0xd   :  { %37 = dma.hbm_to_vmem [thread:$0]  %s1232_s2, 1024, %s32_s19, [#allocation10], %s1136_s23, %s1136_s23, %s1137_s24  }
   0xe   :  { %s1076_s27 = scalar_lea.vmem %s20_s21, 1024  ;;  %p1081_p6 = scmp.lt.s32.totalorder %s20_s21, %s20_s21 }
   0xf   :  { %p1077_p5 = scmp.ne.s32.totalorder %s20_s21, %s1076_s27  ;;  %p1082_p7 = scmp.lt.s32.totalorder %s1076_s27, %s1076_s27 }
  0x11   :  { %p1083_p8 = por %p1082_p7, %p1081_p6 }
  0x13   :  { %p1084_p9 = pnand %p1083_p8, %p1077_p5 }
  0x15   :  { %1087 = shalt.err (!%p1084_p9)
}
  0x16   :  { %25 = dma.hbm_to_vmem [thread:$0]  %s1231_s1, 1024, %s20_s21, [#allocation7], %s1136_s23, %s1136_s23, %s1137_s24  }
  0x17   :  { %s1138_s30 = smov [#allocation11]  }
  0x18   :  { %s43_s6 = sshll.u32 %s1138_s30, 4  ;;  %s44_s6 = int_to_ptr.vmem [resolvable:$true] %s43_s6 }
  0x19   :  { %s1096_s7 = scalar_lea.vmem %s44_s6, 2048  ;;  %p1101_p11 = scmp.lt.s32.totalorder %s44_s6, %s44_s6 }
  0x1a   :  { %p1097_p10 = scmp.ne.s32.totalorder %s44_s6, %s1096_s7  ;;  %p1102_p12 = scmp.lt.s32.totalorder %s1096_s7, %s1096_s7 }
  0x1c   :  { %p1103_p13 = por %p1102_p12, %p1101_p11 }
  0x1e   :  { %p1104_p0 = pnand %p1103_p13, %p1097_p10 }
  0x20   :  { %1107 = shalt.err (!%p1104_p0)
}
  0x21   :  { %s1139_s2 = smov 128   ;;  %s1140_s8 = smov 8  }
  0x22   :  { %49 = dma.hbm_to_vmem [thread:$0]  %s1233_s3, 2048, %s44_s6, [#allocation10], %s1139_s2, %s1139_s2, %s1140_s8  }
  0x23   :  { %1128 = dma.done.wait [#allocation7], 1024  }
  0x24   :  { %1129 = vsyncadd [#allocation7], 4294966272 }
  0x25   :  { %1130 = dma.done.wait [#allocation10], 3072  }
  0x26   :  { %1131 = vsyncadd [#allocation10], 4294964224  ;;  %vm82_vm0 = vcmask 7168   ;;  %v1141_v0 = vmov 0.0   ;;  %p810_p1 = scmp.eq.s32.totalorder %s1230_s0, 0 }
  0x27   :  { %66 = vst [vmem:[#allocation2 + $0x30] sm:$0xff] %v1141_v0  ;;  %67 = vst [vmem:[#allocation2] sm:$0xff] %v1141_v0 }
  0x28   :  { %68 = vst [vmem:[#allocation2 + $0x58] sm:$0xff] %v1141_v0  ;;  %69 = vst [vmem:[#allocation2 + $0x18] sm:$0xff] %v1141_v0 }
  0x29   :  { %70 = vst [vmem:[#allocation2 + $0x50] sm:$0xff] %v1141_v0  ;;  %71 = vst [vmem:[#allocation2 + $0x68] sm:$0xff] %v1141_v0 }
  0x2a   :  { %72 = vst [vmem:[#allocation2 + $0x8] sm:$0xff] %v1141_v0  ;;  %73 = vst [vmem:[#allocation2 + $0x48] sm:$0xff] %v1141_v0 }
  0x2b   :  { %74 = vst [vmem:[#allocation2 + $0x40] sm:$0xff] %v1141_v0  ;;  %75 = vst [vmem:[#allocation2 + $0x20] sm:$0xff] %v1141_v0 }
  0x2c   :  { %76 = vst [vmem:[#allocation2 + $0x10] sm:$0xff] %v1141_v0  ;;  %77 = vst [vmem:[#allocation2 + $0x38] sm:$0xff] %v1141_v0 }
  0x2d   :  { %78 = vst [vmem:[#allocation2 + $0x60] sm:$0xff] %v1141_v0  ;;  %79 = vst [vmem:[#allocation2 + $0x70] sm:$0xff] %v1141_v0 }
  0x2e   :  { %80 = vst [vmem:[#allocation2 + $0x78] sm:$0xff] %v1141_v0  ;;  %81 = vst [vmem:[#allocation2 + $0x28] sm:$0xff] %v1141_v0 }
  0x2f   :  { %83 = vst.msk [vmem:[#allocation3] sm:$0xff] %vm82_vm0, %v1141_v0  ;;  %84 = vst.msk [vmem:[#allocation3 + $0x8] sm:$0xff] %vm82_vm0, %v1141_v0 }
  0x30   :  { %85 = vst.msk [vmem:[#allocation3 + $0x10] sm:$0xff] %vm82_vm0, %v1141_v0  ;;  %86 = vst.msk [vmem:[#allocation3 + $0x18] sm:$0xff] %vm82_vm0, %v1141_v0 }
  0x31   :  { %87 = vst.msk [vmem:[#allocation3 + $0x20] sm:$0xff] %vm82_vm0, %v1141_v0  ;;  %88 = vst.msk [vmem:[#allocation3 + $0x28] sm:$0xff] %vm82_vm0, %v1141_v0 }
  0x32   :  { %89 = vst.msk [vmem:[#allocation3 + $0x30] sm:$0xff] %vm82_vm0, %v1141_v0  ;;  %90 = vst.msk [vmem:[#allocation3 + $0x38] sm:$0xff] %vm82_vm0, %v1141_v0  ;;  %106 = sbr.rel (%p810_p1) target bundleno = 298 (0x12a), region = 37 }
  0x33   :  { %91 = vst.msk [vmem:[#allocation3 + $0x40] sm:$0xff] %vm82_vm0, %v1141_v0  ;;  %92 = vst.msk [vmem:[#allocation3 + $0x48] sm:$0xff] %vm82_vm0, %v1141_v0 }
  0x34   :  { %93 = vst.msk [vmem:[#allocation3 + $0x50] sm:$0xff] %vm82_vm0, %v1141_v0  ;;  %94 = vst.msk [vmem:[#allocation3 + $0x58] sm:$0xff] %vm82_vm0, %v1141_v0 }
  0x35   :  { %95 = vst.msk [vmem:[#allocation3 + $0x60] sm:$0xff] %vm82_vm0, %v1141_v0  ;;  %96 = vst.msk [vmem:[#allocation3 + $0x68] sm:$0xff] %vm82_vm0, %v1141_v0 }
  0x36   :  { %97 = vst.msk [vmem:[#allocation3 + $0x70] sm:$0xff] %vm82_vm0, %v1141_v0  ;;  %98 = vst.msk [vmem:[#allocation3 + $0x78] sm:$0xff] %vm82_vm0, %v1141_v0 }
  0x37   :  { %v1022_v1 = vld [vmem:[#allocation9 + $0x38] sm:$0xff]   ;;  %v1023_v2 = vld [vmem:[#allocation9 + $0x30] sm:$0xff]   ;;  %v1024_v3 = vld [vmem:[#allocation9 + $0x28] sm:$0xff]  }
  0x38   :  { %876 = vmatprep.subr.bf16.mxu0 %v1022_v1  ;;  %964 = vmatprep.subr.bf16.mxu1 %v1022_v1  ;;  %v1025_v4 = vld [vmem:[#allocation9 + $0x20] sm:$0xff]   ;;  %v109_v7 = vld [vmem:[#allocation6 + $0x8] sm:$0xff]   ;;  %v1026_v10 = vld [vmem:[#allocation9 + $0x18] sm:$0xff]  }
  0x39   :  { %877 = vmatpush3.bf16.msra.mxu0 %v1022_v1  ;;  %972 = vmatpush3.bf16.msra.mxu1 %v1022_v1  ;;  %v107_v5 = vld [vmem:[#allocation6] sm:$0xff]   ;;  %v398_v8 = vunpack.c.l.bf16 %v109_v7  ;;  %v399_v11 = vunpack.c.h.bf16 %v109_v7  ;;  %v1027_v13 = vld [vmem:[#allocation9 + $0x10] sm:$0xff]   ;;  %v1028_v17 = vld [vmem:[#allocation9 + $0x8] sm:$0xff]  }
  0x3a   :  { %878 = vmatprep.subr.bf16.mxu0 %v1023_v2  ;;  %965 = vmatprep.subr.bf16.mxu1 %v1023_v2  ;;  %v115_v6 = vld [vmem:[#allocation6 + $0x20] sm:$0xff]   ;;  %v396_v9 = vunpack.c.l.bf16 %v107_v5  ;;  %v397_v12 = vunpack.c.h.bf16 %v107_v5  ;;  %v111_v14 = vld [vmem:[#allocation6 + $0x10] sm:$0xff]   ;;  %v113_v18 = vld [vmem:[#allocation6 + $0x18] sm:$0xff]  }
  0x3b   :  { %892 = vmatprep.mubr.bf16.mxu0 %v107_v5  ;;  %900 = vmatprep.mubr.bf16.mxu1 %v115_v6  ;;  %v401_v15 = vunpack.c.h.bf16 %v111_v14  ;;  %v400_v16 = vunpack.c.l.bf16 %v111_v14  ;;  %v403_v19 = vunpack.c.h.bf16 %v113_v18  ;;  %v402_v20 = vunpack.c.l.bf16 %v113_v18  ;;  %v1029_v21 = vld [vmem:[#allocation9] sm:$0xff]   ;;  %v117_v24 = vld [vmem:[#allocation6 + $0x28] sm:$0xff]   ;;  %v119_v25 = vld [vmem:[#allocation6 + $0x30] sm:$0xff]  }
  0x3c   :  { %416 = vadd.xlane.f32.xlu1 %v398_v8  ;;  %412 = vadd.xlane.f32.xlu0 %v396_v9  ;;  %v405_v22 = vunpack.c.h.bf16 %v115_v6  ;;  %v404_v23 = vunpack.c.l.bf16 %v115_v6  ;;  %v407_v26 = vunpack.c.h.bf16 %v117_v24  ;;  %v406_v27 = vunpack.c.l.bf16 %v117_v24  ;;  %v121_v28 = vld [vmem:[#allocation6 + $0x38] sm:$0xff]   ;;  %v382_v33 = vld [vmem:[#allocation3 + $0x10] sm:$0xff]  ;;  %v380_v34 = vld [vmem:[#allocation3] sm:$0xff] }
  0x3d   :  { %879 = vmatpush3.bf16.msra.mxu0 %v1023_v2  ;;  %973 = vmatpush3.bf16.msra.mxu1 %v1023_v2  ;;  %v409_v29 = vunpack.c.h.bf16 %v119_v25  ;;  %v408_v30 = vunpack.c.l.bf16 %v119_v25  ;;  %v411_v31 = vunpack.c.h.bf16 %v121_v28  ;;  %v410_v32 = vunpack.c.l.bf16 %v121_v28  ;;  %v383_v39 = vld [vmem:[#allocation3 + $0x18] sm:$0xff]  ;;  %v381_v40 = vld [vmem:[#allocation3 + $0x8] sm:$0xff]  ;;  %v384_v46 = vld [vmem:[#allocation3 + $0x20] sm:$0xff] }
  0x3e   :  { %880 = vmatprep.subr.bf16.mxu0 %v1024_v3  ;;  %966 = vmatprep.subr.bf16.mxu1 %v1024_v3  ;;  %v385_v45 = vld [vmem:[#allocation3 + $0x28] sm:$0xff]  ;;  %v387_v51 = vld [vmem:[#allocation3 + $0x38] sm:$0xff]  ;;  %v386_v52 = vld [vmem:[#allocation3 + $0x30] sm:$0xff] }
  0x3f   :  { %v389_v57 = vld [vmem:[#allocation3 + $0x48] sm:$0xff]  ;;  %v388_v58 = vld [vmem:[#allocation3 + $0x40] sm:$0xff]  ;;  %v391_v63 = vld [vmem:[#allocation3 + $0x58] sm:$0xff] }
  0x40   :  { %418 = vadd.xlane.f32.xlu1 %v399_v11  ;;  %414 = vadd.xlane.f32.xlu0 %v397_v12  ;;  %v390_v0 = vld [vmem:[#allocation3 + $0x50] sm:$0xff]  ;;  %v393_v5 = vld [vmem:[#allocation3 + $0x68] sm:$0xff]  ;;  %v392_v6 = vld [vmem:[#allocation3 + $0x60] sm:$0xff] }
  0x41   :  { %881 = vmatpush3.bf16.msra.mxu0 %v1024_v3  ;;  %974 = vmatpush3.bf16.msra.mxu1 %v1024_v3  ;;  %v395_v11 = vld [vmem:[#allocation3 + $0x78] sm:$0xff]  ;;  %v394_v12 = vld [vmem:[#allocation3 + $0x70] sm:$0xff] }
  0x42   :  { %882 = vmatprep.subr.bf16.mxu0 %v1025_v4  ;;  %967 = vmatprep.subr.bf16.mxu1 %v1025_v4 }
  0x44   :  { %422 = vadd.xlane.f32.xlu1 %v401_v15  ;;  %420 = vadd.xlane.f32.xlu0 %v400_v16 }
  0x45   :  { %883 = vmatpush3.bf16.msra.mxu0 %v1025_v4  ;;  %975 = vmatpush3.bf16.msra.mxu1 %v1025_v4 }
  0x46   :  { %884 = vmatprep.subr.bf16.mxu0 %v1026_v10  ;;  %968 = vmatprep.subr.bf16.mxu1 %v1026_v10 }
  0x48   :  { %426 = vadd.xlane.f32.xlu1 %v403_v19  ;;  %424 = vadd.xlane.f32.xlu0 %v402_v20 }
  0x49   :  { %885 = vmatpush3.bf16.msra.mxu0 %v1026_v10  ;;  %976 = vmatpush3.bf16.msra.mxu1 %v1026_v10 }
  0x4a   :  { %886 = vmatprep.subr.bf16.mxu0 %v1027_v13  ;;  %969 = vmatprep.subr.bf16.mxu1 %v1027_v13 }
  0x4c   :  { %430 = vadd.xlane.f32.xlu1 %v405_v22  ;;  %428 = vadd.xlane.f32.xlu0 %v404_v23  ;;  %v123_v22 = vld [vmem:[#allocation2 + $0x30] sm:$0xff] }
  0x4d   :  { %887 = vmatpush3.bf16.msra.mxu0 %v1027_v13  ;;  %977 = vmatpush3.bf16.msra.mxu1 %v1027_v13 }
  0x4e   :  { %888 = vmatprep.subr.bf16.mxu0 %v1028_v17  ;;  %970 = vmatprep.subr.bf16.mxu1 %v1028_v17 }
  0x50   :  { %434 = vadd.xlane.f32.xlu1 %v407_v26  ;;  %432 = vadd.xlane.f32.xlu0 %v406_v27  ;;  %v126_v27 = vld [vmem:[#allocation2 + $0x18] sm:$0xff] }
  0x51   :  { %889 = vmatpush3.bf16.msra.mxu0 %v1028_v17  ;;  %978 = vmatpush3.bf16.msra.mxu1 %v1028_v17  ;;  %v125_v17 = vld [vmem:[#allocation2 + $0x58] sm:$0xff] }
  0x52   :  { %890 = vmatprep.subr.bf16.mxu0 %v1029_v21  ;;  %971 = vmatprep.subr.bf16.mxu1 %v1029_v21 }
  0x54   :  { %438 = vadd.xlane.f32.xlu1 %v409_v29  ;;  %436 = vadd.xlane.f32.xlu0 %v408_v30 }
  0x55   :  { %891 = vmatpush3.bf16.msra.mxu0 %v1029_v21  ;;  %979 = vmatpush3.bf16.msra.mxu1 %v1029_v21  ;;  %v131_v21 = vld [vmem:[#allocation2 + $0x40] sm:$0xff] }
  0x58   :  { %893 = vmatmul.mubr.bf16.vlgmr.msra.gmra.mxu0 %v109_v7  ;;  %901 = vmatmul.mubr.bf16.vlgmr.msra.gmra.mxu1 %v117_v24 }
  0x59   :  { %896 = vmatprep.mubr.bf16.mxu0 %v111_v14  ;;  %904 = vmatprep.mubr.bf16.mxu1 %v119_v25 }
  0x5a   :  { %442 = vadd.xlane.f32.xlu1 %v411_v31  ;;  %440 = vadd.xlane.f32.xlu0 %v410_v32 }
  0x60   :  { %897 = vmatmul.mubr.bf16.gmra.mxu0 %v113_v18  ;;  %905 = vmatmul.mubr.bf16.gmra.mxu1 %v121_v28  ;;  %v133_v18 = vld [vmem:[#allocation2 + $0x10] sm:$0xff]  ;;  %v134_v28 = vld [vmem:[#allocation2 + $0x38] sm:$0xff] }
  0xc5   :  { %v417_v35 = vpop.xlane.xlu1 %416  ;;  %v413_v36 = vpop.xlane.xlu0 %412 }
  0xc6   :  { %v446_v37 = vadd.f32 %v417_v35, %v382_v33  ;;  %v444_v38 = vadd.f32 %v413_v36, %v380_v34  ;;  %v132_v33 = vld [vmem:[#allocation2 + $0x20] sm:$0xff] }
  0xc7   :  { %v124_v34 = vld [vmem:[#allocation2] sm:$0xff] }
  0xc8   :  { %463 = vst.msk [vmem:[#allocation3 + $0x10] sm:$0xff] %vm82_vm0, %v446_v37  ;;  %461 = vst.msk [vmem:[#allocation3] sm:$0xff] %vm82_vm0, %v444_v38 }
  0xc9   :  { %v419_v41 = vpop.xlane.xlu1 %418  ;;  %v415_v42 = vpop.xlane.xlu0 %414 }
  0xca   :  { %v447_v43 = vadd.f32 %v419_v41, %v383_v39  ;;  %v445_v44 = vadd.f32 %v415_v42, %v381_v40  ;;  %v129_v39 = vld [vmem:[#allocation2 + $0x8] sm:$0xff]  ;;  %v137_v40 = vld [vmem:[#allocation2 + $0x78] sm:$0xff] }
  0xcc   :  { %464 = vst.msk [vmem:[#allocation3 + $0x18] sm:$0xff] %vm82_vm0, %v447_v43  ;;  %462 = vst.msk [vmem:[#allocation3 + $0x8] sm:$0xff] %vm82_vm0, %v445_v44 }
  0xcd   :  { %v423_v47 = vpop.xlane.xlu1 %422  ;;  %v421_v48 = vpop.xlane.xlu0 %420 }
  0xce   :  { %v449_v49 = vadd.f32 %v423_v47, %v385_v45  ;;  %v448_v50 = vadd.f32 %v421_v48, %v384_v46  ;;  %v135_v45 = vld [vmem:[#allocation2 + $0x60] sm:$0xff]  ;;  %v127_v46 = vld [vmem:[#allocation2 + $0x50] sm:$0xff] }
  0xd0   :  { %466 = vst.msk [vmem:[#allocation3 + $0x28] sm:$0xff] %vm82_vm0, %v449_v49  ;;  %465 = vst.msk [vmem:[#allocation3 + $0x20] sm:$0xff] %vm82_vm0, %v448_v50 }
  0xd1   :  { %v427_v53 = vpop.xlane.xlu1 %426  ;;  %v425_v54 = vpop.xlane.xlu0 %424 }
  0xd2   :  { %v451_v55 = vadd.f32 %v427_v53, %v387_v51  ;;  %v450_v56 = vadd.f32 %v425_v54, %v386_v52  ;;  %v130_v51 = vld [vmem:[#allocation2 + $0x48] sm:$0xff] }
  0xd3   :  { %v138_v52 = vld [vmem:[#allocation2 + $0x28] sm:$0xff] }
  0xd4   :  { %468 = vst.msk [vmem:[#allocation3 + $0x38] sm:$0xff] %vm82_vm0, %v451_v55  ;;  %467 = vst.msk [vmem:[#allocation3 + $0x30] sm:$0xff] %vm82_vm0, %v450_v56 }
  0xd5   :  { %v431_v59 = vpop.xlane.xlu1 %430  ;;  %v429_v60 = vpop.xlane.xlu0 %428 }
  0xd6   :  { %v453_v61 = vadd.f32 %v431_v59, %v389_v57  ;;  %v452_v62 = vadd.f32 %v429_v60, %v388_v58  ;;  %v136_v57 = vld [vmem:[#allocation2 + $0x70] sm:$0xff]  ;;  %v128_v58 = vld [vmem:[#allocation2 + $0x68] sm:$0xff] }
  0xd8   :  { %470 = vst.msk [vmem:[#allocation3 + $0x48] sm:$0xff] %vm82_vm0, %v453_v61  ;;  %469 = vst.msk [vmem:[#allocation3 + $0x40] sm:$0xff] %vm82_vm0, %v452_v62 }
  0xd9   :  { %v435_v1 = vpop.xlane.xlu1 %434  ;;  %v433_v2 = vpop.xlane.xlu0 %432 }
  0xda   :  { %v455_v3 = vadd.f32 %v435_v1, %v391_v63  ;;  %v454_v4 = vadd.f32 %v433_v2, %v390_v0 }
  0xdc   :  { %472 = vst.msk [vmem:[#allocation3 + $0x58] sm:$0xff] %vm82_vm0, %v455_v3  ;;  %471 = vst.msk [vmem:[#allocation3 + $0x50] sm:$0xff] %vm82_vm0, %v454_v4 }
  0xdd   :  { %v439_v7 = vpop.xlane.xlu1 %438  ;;  %v437_v8 = vpop.xlane.xlu0 %436 }
  0xde   :  { %v457_v9 = vadd.f32 %v439_v7, %v393_v5  ;;  %v456_v10 = vadd.f32 %v437_v8, %v392_v6 }
  0xe0   :  { %474 = vst.msk [vmem:[#allocation3 + $0x68] sm:$0xff] %vm82_vm0, %v457_v9  ;;  %473 = vst.msk [vmem:[#allocation3 + $0x60] sm:$0xff] %vm82_vm0, %v456_v10 }
  0xe3   :  { %v443_v13 = vpop.xlane.xlu1 %442  ;;  %v441_v14 = vpop.xlane.xlu0 %440 }
  0xe4   :  { %v459_v15 = vadd.f32 %v443_v13, %v395_v11  ;;  %v458_v16 = vadd.f32 %v441_v14, %v394_v12 }
  0xe6   :  { %476 = vst.msk [vmem:[#allocation3 + $0x78] sm:$0xff] %vm82_vm0, %v459_v15  ;;  %475 = vst.msk [vmem:[#allocation3 + $0x70] sm:$0xff] %vm82_vm0, %v458_v16 }
 0x118   :  { %v894_v19 = vpop.f32.mrf.mxu0  ;;  %v902_v20 = vpop.f32.mrf.mxu1 }
 0x119   :  { %v350_v23 = vadd.f32 %v894_v19, %v125_v17  ;;  %v358_v24 = vadd.f32 %v902_v20, %v133_v18 }
 0x11a   :  { %v317_v25 = vpop.f32.mrf.mxu1  ;;  %v285_v26 = vpop.f32.mrf.mxu0 }
 0x11b   :  { %366 = vst [vmem:[#allocation2 + $0x58] sm:$0xff] %v350_v23  ;;  %374 = vst [vmem:[#allocation2 + $0x10] sm:$0xff] %v358_v24  ;;  %v356_v29 = vadd.f32 %v317_v25, %v131_v21  ;;  %v348_v30 = vadd.f32 %v285_v26, %v123_v22 }
 0x11c   :  { %v895_v31 = vpop.f32.mrf.mxu0  ;;  %v903_v32 = vpop.f32.mrf.mxu1 }
 0x11d   :  { %372 = vst [vmem:[#allocation2 + $0x40] sm:$0xff] %v356_v29  ;;  %364 = vst [vmem:[#allocation2 + $0x30] sm:$0xff] %v348_v30  ;;  %v351_v35 = vadd.f32 %v895_v31, %v126_v27  ;;  %v359_v36 = vadd.f32 %v903_v32, %v134_v28 }
 0x11e   :  { %v320_v37 = vpop.f32.mrf.mxu1  ;;  %v288_v38 = vpop.f32.mrf.mxu0 }
 0x11f   :  { %367 = vst [vmem:[#allocation2 + $0x18] sm:$0xff] %v351_v35  ;;  %375 = vst [vmem:[#allocation2 + $0x38] sm:$0xff] %v359_v36  ;;  %v357_v41 = vadd.f32 %v320_v37, %v132_v33  ;;  %v349_v42 = vadd.f32 %v288_v38, %v124_v34 }
 0x120   :  { %v898_v43 = vpop.f32.mrf.mxu0  ;;  %v906_v44 = vpop.f32.mrf.mxu1 }
 0x121   :  { %373 = vst [vmem:[#allocation2 + $0x20] sm:$0xff] %v357_v41  ;;  %365 = vst [vmem:[#allocation2] sm:$0xff] %v349_v42  ;;  %v354_v47 = vadd.f32 %v898_v43, %v129_v39  ;;  %v362_v48 = vadd.f32 %v906_v44, %v137_v40 }
 0x122   :  { %v333_v49 = vpop.f32.mrf.mxu1  ;;  %v301_v50 = vpop.f32.mrf.mxu0 }
 0x123   :  { %370 = vst [vmem:[#allocation2 + $0x8] sm:$0xff] %v354_v47  ;;  %378 = vst [vmem:[#allocation2 + $0x78] sm:$0xff] %v362_v48  ;;  %v360_v53 = vadd.f32 %v333_v49, %v135_v45  ;;  %v352_v54 = vadd.f32 %v301_v50, %v127_v46 }
 0x124   :  { %v899_v55 = vpop.f32.mrf.mxu0  ;;  %v907_v56 = vpop.f32.mrf.mxu1 }
 0x125   :  { %376 = vst [vmem:[#allocation2 + $0x60] sm:$0xff] %v360_v53  ;;  %368 = vst [vmem:[#allocation2 + $0x50] sm:$0xff] %v352_v54  ;;  %v355_v59 = vadd.f32 %v899_v55, %v130_v51  ;;  %v363_v60 = vadd.f32 %v907_v56, %v138_v52 }
 0x126   :  { %v336_v61 = vpop.f32.mrf.mxu1  ;;  %v304_v62 = vpop.f32.mrf.mxu0 }
 0x127   :  { %371 = vst [vmem:[#allocation2 + $0x48] sm:$0xff] %v355_v59  ;;  %379 = vst [vmem:[#allocation2 + $0x28] sm:$0xff] %v363_v60  ;;  %v361_v63 = vadd.f32 %v336_v61, %v136_v57  ;;  %v353_v0 = vadd.f32 %v304_v62, %v128_v58 }
 0x129   :  { %377 = vst [vmem:[#allocation2 + $0x70] sm:$0xff] %v361_v63  ;;  %369 = vst [vmem:[#allocation2 + $0x68] sm:$0xff] %v353_v0 }
 0x12a PF:  { %v511_v1 = vld [vmem:[#allocation11 + $0x78] sm:$0xff]  ;;  %v510_v2 = vld [vmem:[#allocation11 + $0x70] sm:$0xff]  ;;  %v509_v3 = vld [vmem:[#allocation11 + $0x68] sm:$0xff]  ;;  %v1142_v29 = vmov 0  }
 0x12b   :  { %908 = vmatprep.subr.mxu0 %v511_v1  ;;  %980 = vmatprep.subr.mxu1 %v511_v1  ;;  %v508_v4 = vld [vmem:[#allocation11 + $0x60] sm:$0xff]  ;;  %v507_v5 = vld [vmem:[#allocation11 + $0x58] sm:$0xff]  ;;  %v506_v6 = vld [vmem:[#allocation11 + $0x50] sm:$0xff] }
 0x12c   :  { %909 = vmatpush3.msra.mxu0 %v511_v1  ;;  %996 = vmatpush3.msra.mxu1 %v511_v1  ;;  %v505_v7 = vld [vmem:[#allocation11 + $0x48] sm:$0xff]  ;;  %v504_v8 = vld [vmem:[#allocation11 + $0x40] sm:$0xff]  ;;  %v503_v9 = vld [vmem:[#allocation11 + $0x38] sm:$0xff] }
 0x12d   :  { %910 = vmatprep.subr.mxu0 %v510_v2  ;;  %981 = vmatprep.subr.mxu1 %v510_v2  ;;  %v502_v10 = vld [vmem:[#allocation11 + $0x30] sm:$0xff]  ;;  %v501_v11 = vld [vmem:[#allocation11 + $0x28] sm:$0xff]  ;;  %v500_v12 = vld [vmem:[#allocation11 + $0x20] sm:$0xff] }
 0x12e   :  { %911 = vmatpush3.msra.mxu0 %v510_v2  ;;  %997 = vmatpush3.msra.mxu1 %v510_v2  ;;  %v499_v13 = vld [vmem:[#allocation11 + $0x18] sm:$0xff]  ;;  %v498_v14 = vld [vmem:[#allocation11 + $0x10] sm:$0xff]  ;;  %v497_v15 = vld [vmem:[#allocation11 + $0x8] sm:$0xff] }
 0x12f   :  { %912 = vmatprep.subr.mxu0 %v509_v3  ;;  %982 = vmatprep.subr.mxu1 %v509_v3  ;;  %v496_v16 = vld [vmem:[#allocation11] sm:$0xff]  ;;  %v480_v17 = vld [vmem:[#allocation2 + $0x30] sm:$0xff]  ;;  %v482_v21 = vld [vmem:[#allocation2 + $0x58] sm:$0xff] }
 0x130   :  { %913 = vmatpush3.msra.mxu0 %v509_v3  ;;  %998 = vmatpush3.msra.mxu1 %v509_v3  ;;  %v488_v18 = vld [vmem:[#allocation2 + $0x40] sm:$0xff]  ;;  %v490_v22 = vld [vmem:[#allocation2 + $0x10] sm:$0xff]  ;;  %v483_v25 = vld [vmem:[#allocation2 + $0x18] sm:$0xff] }
 0x131   :  { %914 = vmatprep.subr.mxu0 %v508_v4  ;;  %983 = vmatprep.subr.mxu1 %v508_v4  ;;  %v481_v19 = vld [vmem:[#allocation2] sm:$0xff]  ;;  %v514_v23 = vld [vmem:[#allocation3 + $0x10] sm:$0xff]  ;;  %v491_v26 = vld [vmem:[#allocation2 + $0x38] sm:$0xff] }
 0x132   :  { %915 = vmatpush3.msra.mxu0 %v508_v4  ;;  %999 = vmatpush3.msra.mxu1 %v508_v4  ;;  %v489_v20 = vld [vmem:[#allocation2 + $0x20] sm:$0xff]  ;;  %v484_v27 = vld [vmem:[#allocation2 + $0x50] sm:$0xff]  ;;  %v515_v30 = vld [vmem:[#allocation3 + $0x18] sm:$0xff] }
 0x133   :  { %916 = vmatprep.subr.mxu0 %v507_v5  ;;  %984 = vmatprep.subr.mxu1 %v507_v5  ;;  %v512_v24 = vld [vmem:[#allocation3] sm:$0xff]  ;;  %v513_v31 = vld [vmem:[#allocation3 + $0x8] sm:$0xff]  ;;  %v493_v33 = vld [vmem:[#allocation2 + $0x70] sm:$0xff] }
 0x134   :  { %917 = vmatpush3.msra.mxu0 %v507_v5  ;;  %1000 = vmatpush3.msra.mxu1 %v507_v5  ;;  %v492_v28 = vld [vmem:[#allocation2 + $0x60] sm:$0xff]  ;;  %v485_v32 = vld [vmem:[#allocation2 + $0x68] sm:$0xff]  ;;  %v494_v35 = vld [vmem:[#allocation2 + $0x78] sm:$0xff] }
 0x135   :  { %918 = vmatprep.subr.mxu0 %v506_v6  ;;  %985 = vmatprep.subr.mxu1 %v506_v6  ;;  %v486_v34 = vld [vmem:[#allocation2 + $0x8] sm:$0xff]  ;;  %v516_v37 = vld [vmem:[#allocation3 + $0x20] sm:$0xff]  ;;  %v519_v40 = vld [vmem:[#allocation3 + $0x38] sm:$0xff] }
 0x136   :  { %919 = vmatpush3.msra.mxu0 %v506_v6  ;;  %1001 = vmatpush3.msra.mxu1 %v506_v6  ;;  %v517_v36 = vld [vmem:[#allocation3 + $0x28] sm:$0xff]  ;;  %v518_v41 = vld [vmem:[#allocation3 + $0x30] sm:$0xff]  ;;  %v520_v43 = vld [vmem:[#allocation3 + $0x40] sm:$0xff] }
 0x137   :  { %920 = vmatprep.subr.mxu0 %v505_v7  ;;  %986 = vmatprep.subr.mxu1 %v505_v7  ;;  %v487_v38 = vld [vmem:[#allocation2 + $0x48] sm:$0xff]  ;;  %v523_v44 = vld [vmem:[#allocation3 + $0x58] sm:$0xff]  ;;  %v522_v45 = vld [vmem:[#allocation3 + $0x50] sm:$0xff] }
 0x138   :  { %921 = vmatpush3.msra.mxu0 %v505_v7  ;;  %1002 = vmatpush3.msra.mxu1 %v505_v7  ;;  %v495_v39 = vld [vmem:[#allocation2 + $0x28] sm:$0xff]  ;;  %v524_v47 = vld [vmem:[#allocation3 + $0x60] sm:$0xff]  ;;  %v527_v48 = vld [vmem:[#allocation3 + $0x78] sm:$0xff] }
 0x139   :  { %922 = vmatprep.subr.mxu0 %v504_v8  ;;  %987 = vmatprep.subr.mxu1 %v504_v8  ;;  %v521_v42 = vld [vmem:[#allocation3 + $0x48] sm:$0xff]  ;;  %v526_v49 = vld [vmem:[#allocation3 + $0x70] sm:$0xff]  ;;  %v827_v61 = vld [vmem:[%s1234_s4] ss:$0 sm:$0xff]  ;;  %s1143_s4 = smov [#allocation12]  }
 0x13a   :  { %923 = vmatpush3.msra.mxu0 %v504_v8  ;;  %1003 = vmatpush3.msra.mxu1 %v504_v8  ;;  %v525_v46 = vld [vmem:[#allocation3 + $0x68] sm:$0xff]  ;;  %s797_s12 = sshll.u32 %s1143_s4, 4  ;;  %s798_s12 = int_to_ptr.vmem [resolvable:$true] %s797_s12 }
 0x13b   :  { %924 = vmatprep.subr.mxu0 %v503_v9  ;;  %988 = vmatprep.subr.mxu1 %v503_v9  ;;  %s1108_s13 = scalar_lea.vmem %s798_s12, 2048  ;;  %p1113_p3 = scmp.lt.s32.totalorder %s798_s12, %s798_s12 }
 0x13c   :  { %925 = vmatpush3.msra.mxu0 %v503_v9  ;;  %1004 = vmatpush3.msra.mxu1 %v503_v9  ;;  %p1109_p2 = scmp.ne.s32.totalorder %s798_s12, %s1108_s13  ;;  %p1114_p4 = scmp.lt.s32.totalorder %s1108_s13, %s1108_s13 }
 0x13d   :  { %926 = vmatprep.subr.mxu0 %v502_v10  ;;  %989 = vmatprep.subr.mxu1 %v502_v10 }
 0x13e   :  { %927 = vmatpush3.msra.mxu0 %v502_v10  ;;  %1005 = vmatpush3.msra.mxu1 %v502_v10  ;;  %p1115_p5 = por %p1114_p4, %p1113_p3 }
 0x13f   :  { %928 = vmatprep.subr.mxu0 %v501_v11  ;;  %990 = vmatprep.subr.mxu1 %v501_v11 }
 0x140   :  { %929 = vmatpush3.msra.mxu0 %v501_v11  ;;  %1006 = vmatpush3.msra.mxu1 %v501_v11  ;;  %p1116_p6 = pnand %p1115_p5, %p1109_p2 }
 0x141   :  { %930 = vmatprep.subr.mxu0 %v500_v12  ;;  %991 = vmatprep.subr.mxu1 %v500_v12 }
 0x142   :  { %931 = vmatpush3.msra.mxu0 %v500_v12  ;;  %1007 = vmatpush3.msra.mxu1 %v500_v12 }
 0x143   :  { %932 = vmatprep.subr.mxu0 %v499_v13  ;;  %992 = vmatprep.subr.mxu1 %v499_v13 }
 0x144   :  { %933 = vmatpush3.msra.mxu0 %v499_v13  ;;  %1008 = vmatpush3.msra.mxu1 %v499_v13 }
 0x145   :  { %934 = vmatprep.subr.mxu0 %v498_v14  ;;  %993 = vmatprep.subr.mxu1 %v498_v14 }
 0x146   :  { %935 = vmatpush3.msra.mxu0 %v498_v14  ;;  %1009 = vmatpush3.msra.mxu1 %v498_v14 }
 0x147   :  { %936 = vmatprep.subr.mxu0 %v497_v15  ;;  %994 = vmatprep.subr.mxu1 %v497_v15 }
 0x148   :  { %937 = vmatpush3.msra.mxu0 %v497_v15  ;;  %1010 = vmatpush3.msra.mxu1 %v497_v15 }
 0x149   :  { %938 = vmatprep.subr.mxu0 %v496_v16  ;;  %995 = vmatprep.subr.mxu1 %v496_v16 }
 0x14a   :  { %939 = vmatpush3.msra.mxu0 %v496_v16  ;;  %1011 = vmatpush3.msra.mxu1 %v496_v16 }
 0x14b   :  { %940 = vmatprep.mubr.f32.mxu0 %v480_v17  ;;  %952 = vmatprep.mubr.f32.mxu1 %v488_v18 }
 0x14c   :  { %941 = vmatmul.mubr.f32.vlgmr.msra.gmra.mxu0 %v481_v19  ;;  %953 = vmatmul.mubr.f32.vlgmr.msra.gmra.mxu1 %v489_v20 }
 0x14d   :  { %943 = vmatprep.mubr.f32.mxu0 %v482_v21  ;;  %955 = vmatprep.mubr.f32.mxu1 %v490_v22 }
 0x14e   :  { %1047 = vset.pattern.permute.xlu1 %v1142_v29  ;;  %1046 = vset.pattern.permute.xlu0 %v1142_v29 }
 0x14f   :  { %541 = vperm.xlu1 %1047, %v514_v23   ;;  %531 = vperm.xlu0 %1046, %v512_v24  }
 0x150   :  { %944 = vmatmul.mubr.f32.gmra.mxu0 %v483_v25  ;;  %956 = vmatmul.mubr.f32.gmra.mxu1 %v491_v26 }
 0x151   :  { %946 = vmatprep.mubr.f32.mxu0 %v484_v27  ;;  %958 = vmatprep.mubr.f32.mxu1 %v492_v28 }
 0x153   :  { %546 = vperm.xlu1 %1047, %v515_v30   ;;  %536 = vperm.xlu0 %1046, %v513_v31  }
 0x154   :  { %947 = vmatmul.mubr.f32.gmra.mxu0 %v485_v32  ;;  %959 = vmatmul.mubr.f32.gmra.mxu1 %v493_v33 }
 0x155   :  { %949 = vmatprep.mubr.f32.mxu0 %v486_v34  ;;  %961 = vmatprep.mubr.f32.mxu1 %v494_v35 }
 0x157   :  { %556 = vperm.xlu1 %1047, %v517_v36   ;;  %551 = vperm.xlu0 %1046, %v516_v37  }
 0x158   :  { %950 = vmatmul.mubr.f32.gmra.mxu0 %v487_v38  ;;  %962 = vmatmul.mubr.f32.gmra.mxu1 %v495_v39 }
 0x15b   :  { %566 = vperm.xlu1 %1047, %v519_v40   ;;  %561 = vperm.xlu0 %1046, %v518_v41  }
 0x15f   :  { %576 = vperm.xlu1 %1047, %v521_v42   ;;  %571 = vperm.xlu0 %1046, %v520_v43  }
 0x163   :  { %586 = vperm.xlu1 %1047, %v523_v44   ;;  %581 = vperm.xlu0 %1046, %v522_v45  }
 0x167   :  { %596 = vperm.xlu1 %1047, %v525_v46   ;;  %591 = vperm.xlu0 %1046, %v524_v47  }
 0x16b   :  { %606 = vperm.xlu1 %1047, %v527_v48   ;;  %601 = vperm.xlu0 %1046, %v526_v49  }
 0x1ca   :  { %v542_v50 = vpop.permute.xlu1 %541  ;;  %v532_v51 = vpop.permute.xlu0 %531 }
 0x1cb   :  { %v615_v3 = vmul.f32 %v827_v61, %v532_v51  ;;  %v617_v17 = vmul.f32 %v827_v61, %v542_v50 }
 0x1ce   :  { %v547_v52 = vpop.permute.xlu1 %546  ;;  %v537_v53 = vpop.permute.xlu0 %536 }
 0x1cf   :  { %v616_v63 = vmul.f32 %v827_v61, %v537_v53  ;;  %v618_v10 = vmul.f32 %v827_v61, %v547_v52 }
 0x1d2   :  { %v557_v54 = vpop.permute.xlu1 %556  ;;  %v552_v55 = vpop.permute.xlu0 %551 }
 0x1d3   :  { %v620_v23 = vmul.f32 %v827_v61, %v557_v54  ;;  %v619_v30 = vmul.f32 %v827_v61, %v552_v55 }
 0x1d6   :  { %v567_v56 = vpop.permute.xlu1 %566  ;;  %v562_v57 = vpop.permute.xlu0 %561 }
 0x1d7   :  { %v622_v37 = vmul.f32 %v827_v61, %v567_v56  ;;  %v621_v43 = vmul.f32 %v827_v61, %v562_v57 }
 0x1da   :  { %v577_v58 = vpop.permute.xlu1 %576  ;;  %v572_v59 = vpop.permute.xlu0 %571 }
 0x1db   :  { %v624_v0 = vmul.f32 %v827_v61, %v577_v58  ;;  %v623_v4 = vmul.f32 %v827_v61, %v572_v59 }
 0x1de   :  { %v587_v60 = vpop.permute.xlu1 %586  ;;  %v582_v62 = vpop.permute.xlu0 %581 }
 0x1df   :  { %v626_v11 = vmul.f32 %v827_v61, %v587_v60  ;;  %v625_v18 = vmul.f32 %v827_v61, %v582_v62 }
 0x1e2   :  { %v597_v5 = vpop.permute.xlu1 %596  ;;  %v592_v12 = vpop.permute.xlu0 %591 }
 0x1e3   :  { %v628_v24 = vmul.f32 %v827_v61, %v597_v5  ;;  %v627_v31 = vmul.f32 %v827_v61, %v592_v12 }
 0x1e6   :  { %v607_v25 = vpop.permute.xlu1 %606  ;;  %v602_v32 = vpop.permute.xlu0 %601 }
 0x1e7   :  { %v630_v38 = vmul.f32 %v827_v61, %v607_v25  ;;  %v629_v44 = vmul.f32 %v827_v61, %v602_v32 }
 0x20c   :  { %v942_v1 = vpop.f32.mrf.mxu0  ;;  %v954_v2 = vpop.f32.mrf.mxu1 }
 0x20d   :  { %v703_v6 = vadd.f32 %v942_v1, %v616_v63  ;;  %v743_v7 = vadd.f32 %v954_v2, %v624_v0 }
 0x20e   :  { %v697_v8 = vpop.f32.mrf.mxu0  ;;  %v737_v9 = vpop.f32.mrf.mxu1 }
 0x20f   :  { %777 = vst [vmem:[#allocation12 + $0x8] sm:$0xff] %v703_v6  ;;  %785 = vst [vmem:[#allocation12 + $0x48] sm:$0xff] %v743_v7  ;;  %v698_v13 = vadd.f32 %v697_v8, %v615_v3  ;;  %v738_v14 = vadd.f32 %v737_v9, %v623_v4 }
 0x210   :  { %v945_v15 = vpop.f32.mrf.mxu0  ;;  %v957_v16 = vpop.f32.mrf.mxu1 }
 0x211   :  { %776 = vst [vmem:[#allocation12] sm:$0xff] %v698_v13  ;;  %784 = vst [vmem:[#allocation12 + $0x40] sm:$0xff] %v738_v14  ;;  %v713_v19 = vadd.f32 %v945_v15, %v618_v10  ;;  %v753_v20 = vadd.f32 %v957_v16, %v626_v11 }
 0x212   :  { %v707_v21 = vpop.f32.mrf.mxu0  ;;  %v747_v22 = vpop.f32.mrf.mxu1 }
 0x213   :  { %779 = vst [vmem:[#allocation12 + $0x18] sm:$0xff] %v713_v19  ;;  %787 = vst [vmem:[#allocation12 + $0x58] sm:$0xff] %v753_v20  ;;  %v708_v26 = vadd.f32 %v707_v21, %v617_v17  ;;  %v748_v27 = vadd.f32 %v747_v22, %v625_v18 }
 0x214   :  { %v948_v28 = vpop.f32.mrf.mxu0  ;;  %v960_v29 = vpop.f32.mrf.mxu1 }
 0x215   :  { %778 = vst [vmem:[#allocation12 + $0x10] sm:$0xff] %v708_v26  ;;  %786 = vst [vmem:[#allocation12 + $0x50] sm:$0xff] %v748_v27  ;;  %v723_v33 = vadd.f32 %v948_v28, %v620_v23  ;;  %v763_v34 = vadd.f32 %v960_v29, %v628_v24 }
 0x216   :  { %v717_v35 = vpop.f32.mrf.mxu0  ;;  %v757_v36 = vpop.f32.mrf.mxu1 }
 0x217   :  { %781 = vst [vmem:[#allocation12 + $0x28] sm:$0xff] %v723_v33  ;;  %789 = vst [vmem:[#allocation12 + $0x68] sm:$0xff] %v763_v34  ;;  %v718_v39 = vadd.f32 %v717_v35, %v619_v30  ;;  %v758_v40 = vadd.f32 %v757_v36, %v627_v31 }
 0x218   :  { %v951_v41 = vpop.f32.mrf.mxu0  ;;  %v963_v42 = vpop.f32.mrf.mxu1 }
 0x219   :  { %780 = vst [vmem:[#allocation12 + $0x20] sm:$0xff] %v718_v39  ;;  %788 = vst [vmem:[#allocation12 + $0x60] sm:$0xff] %v758_v40  ;;  %v733_v45 = vadd.f32 %v951_v41, %v622_v37  ;;  %v773_v46 = vadd.f32 %v963_v42, %v630_v38 }
 0x21a   :  { %v727_v47 = vpop.f32.mrf.mxu0  ;;  %v767_v48 = vpop.f32.mrf.mxu1 }
 0x21b   :  { %783 = vst [vmem:[#allocation12 + $0x38] sm:$0xff] %v733_v45  ;;  %791 = vst [vmem:[#allocation12 + $0x78] sm:$0xff] %v773_v46  ;;  %v728_v49 = vadd.f32 %v727_v47, %v621_v43  ;;  %v768_v50 = vadd.f32 %v767_v48, %v629_v44 }
 0x21d   :  { %782 = vst [vmem:[#allocation12 + $0x30] sm:$0xff] %v728_v49  ;;  %790 = vst [vmem:[#allocation12 + $0x70] sm:$0xff] %v768_v50 }
 0x21e   :  { %1119 = shalt.err (!%p1116_p6)
}
 0x21f   :  { %803 = dma.vmem_to_hbm [thread:$0]  %s798_s12, 2048, %s1235_s5, [#allocation8], %s1139_s2, %s1139_s2, %s1140_s8  }
 0x220   :  { %1132 = dma.done.wait [#allocation8], 2048  }
 0x221   :  { %1133 = vsyncadd [#allocation8], 4294965248 }
 0x222   :  { %807 = vsyncpa [#allocation7], 1 }
 0x223   :  { %808 = vsyncpa [#allocation10], 1 }
 0x224   :  { %809 = vsyncpa [#allocation8], 1 }

</bundles_post_ra>
